<compile_context>
chip_gen: v5e
topology: v5e:2x2
jax: 0.10.0
libtpu: 0.0.40
codegen_flags: <defaults>
</compile_context>

<pallas_src>
import functools

import jax
import jax.numpy as jnp
from jax.experimental import pallas as pl
from jax.experimental.pallas import tpu as pltpu

HIDDEN1_UNITS = 300
HIDDEN2_UNITS = 600
STATE_SIZE = 29

STATE_PAD = 32      # fc1 K dim padded to a clean sublane/packing multiple
HIDDEN1_PAD = 384   # 300 -> 3 * 128 (lane-dense h1)
HIDDEN2_PAD = 640   # 600 -> 5 * 128 (lane-dense h2)
HEAD_PAD = 128      # fused heads padded to a full lane width (unmasked stores)


def _round_up(x, m):
    return (x + m - 1) // m * m


def actor_kernel(x_ref, w1_ref, b1_ref, w2_ref, b2_ref, w3_ref, b3_ref,
                 scale_ref, offset_ref, o_ref):
    # fc1 + ReLU: bf16 MXU operands, f32 accumulation, f32 elementwise,
    # result stored bf16 (halves spill traffic for the next dot).
    h1 = jnp.dot(x_ref[...], w1_ref[...], preferred_element_type=jnp.float32)
    h1 = jnp.maximum(h1 + b1_ref[...], 0.0).astype(jnp.bfloat16)

    # fc2 + ReLU
    h2 = jnp.dot(h1, w2_ref[...], preferred_element_type=jnp.float32)
    h2 = jnp.maximum(h2 + b2_ref[...], 0.0).astype(jnp.bfloat16)

    # Fused, lane-padded heads: [TB, 640] @ [640, 128] + [1, 128]
    z = jnp.dot(h2, w3_ref[...], preferred_element_type=jnp.float32)
    z = z + b3_ref[...]

    # Column 0 -> tanh (steering); other columns -> sigmoid (accel/brake/pad).
    # sigmoid(z) = 0.5 * (1 + tanh(0.5 * z)); selection is done by two tiny
    # resident f32 vectors (scale = 1 / 0.5, offset = 0 / 0.5): one EUP tanh,
    # two FMAs, no iota/compare/select VALU filler.
    s = scale_ref[...]
    out = jnp.tanh(z * s) * s + offset_ref[...]
    o_ref[...] = out.astype(o_ref.dtype)


@functools.partial(jax.jit, static_argnames=("tile_b",))
def actor_forward(x, kernel_params, *, tile_b=512):
    """x: [B, 29] f32. kernel_params: packed params from prepare_params()."""
    w1, b1, w2, b2, w3, b3, act_scale, act_offset = kernel_params
    B = x.shape[0]

    # Batch tiling: cap at tile_b, and when the batch is big enough split it
    # into >= 2 grid steps so both v7x TensorCores get work ("parallel" axis).
    b_min = _round_up(B, 8)
    tb = min(tile_b, b_min)
    if tb == b_min and b_min >= 16:
        tb = _round_up((b_min + 1) // 2, 8)
    b_pad = _round_up(B, tb)

    # Pad feature dim 29 -> 32 and batch -> multiple of the tile; bf16 operands.
    x_pad = jnp.zeros((b_pad, STATE_PAD), w1.dtype).at[:B, :STATE_SIZE].set(
        x.astype(w1.dtype))

    def resident(arr):
        # Whole-array block with a constant block index: loaded into VMEM once,
        # kept resident across every batch tile.
        return pl.BlockSpec(arr.shape, lambda i: (0, 0))

    out = pl.pallas_call(
        actor_kernel,
        out_shape=jax.ShapeDtypeStruct((b_pad, HEAD_PAD), jnp.bfloat16),
        grid=(b_pad // tb,),
        in_specs=[
            pl.BlockSpec((tb, STATE_PAD), lambda i: (i, 0)),   # x tile (pipelined)
            resident(w1), resident(b1),
            resident(w2), resident(b2),
            resident(w3), resident(b3),
            resident(act_scale), resident(act_offset),
        ],
        out_specs=pl.BlockSpec((tb, HEAD_PAD), lambda i: (i, 0)),
        compiler_params=pltpu.CompilerParams(
            dimension_semantics=("parallel",),     # shard batch tiles across TCs (v7x)
            vmem_limit_bytes=32 * 1024 * 1024,     # safe on v5e/v6e/v7x
        ),
    )(x_pad, w1, b1, w2, b2, w3, b3, act_scale, act_offset)

    return out[:B, :3].astype(jnp.float32)


def init_params(key):
    """f32 reference parameters matching the PyTorch shapes (stored transposed
    as [in_features, out_features]); heads fused into w3[600, 3] / b3[1, 3]."""
    k1, k2, k3, k4, k5, k6 = jax.random.split(key, 6)

    def linear_init(kw, kb, fan_in, fan_out):
        bound = 1.0 / jnp.sqrt(jnp.float32(fan_in))
        w = jax.random.uniform(kw, (fan_in, fan_out), jnp.float32, -bound, bound)
        b = jax.random.uniform(kb, (1, fan_out), jnp.float32, -bound, bound)
        return w, b

    w1, b1 = linear_init(k1, k2, STATE_SIZE, HIDDEN1_UNITS)
    w2, b2 = linear_init(k3, k4, HIDDEN1_UNITS, HIDDEN2_UNITS)

    # Head weights: normal(0, 0.0001) per nn.init.normal_ in the module.
    w3 = 0.0001 * jax.random.normal(k5, (HIDDEN2_UNITS, 3), jnp.float32)
    bound3 = 1.0 / jnp.sqrt(jnp.float32(HIDDEN2_UNITS))
    b3 = jax.random.uniform(k6, (1, 3), jnp.float32, -bound3, bound3)

    return (w1, b1, w2, b2, w3, b3)


def prepare_params(params, compute_dtype=jnp.bfloat16):
    """Pack f32 params into the kernel layout: pad fc1 K 29->32, lane-pad the
    hidden dims 300->384 / 600->640 and the fused heads 3->128, cast weights to
    bf16 (biases and activation-select vectors stay f32)."""
    w1, b1, w2, b2, w3, b3 = params

    w1p = jnp.zeros((STATE_PAD, HIDDEN1_PAD), jnp.float32)
    w1p = w1p.at[:STATE_SIZE, :HIDDEN1_UNITS].set(w1)
    b1p = jnp.zeros((1, HIDDEN1_PAD), jnp.float32).at[:, :HIDDEN1_UNITS].set(b1)

    w2p = jnp.zeros((HIDDEN1_PAD, HIDDEN2_PAD), jnp.float32)
    w2p = w2p.at[:HIDDEN1_UNITS, :HIDDEN2_UNITS].set(w2)
    b2p = jnp.zeros((1, HIDDEN2_PAD), jnp.float32).at[:, :HIDDEN2_UNITS].set(b2)

    w3p = jnp.zeros((HIDDEN2_PAD, HEAD_PAD), jnp.float32)
    w3p = w3p.at[:HIDDEN2_UNITS, :3].set(w3)
    b3p = jnp.zeros((1, HEAD_PAD), jnp.float32).at[:, :3].set(b3)

    # Activation select vectors: col 0 -> tanh, other cols -> sigmoid.
    #   out = tanh(z * scale) * scale + offset
    #   scale = 1.0 (col 0) / 0.5 (else),  offset = 0.0 (col 0) / 0.5 (else)
    col = jnp.arange(HEAD_PAD)[None, :]
    act_scale = jnp.where(col == 0, 1.0, 0.5).astype(jnp.float32)
    act_offset = jnp.where(col == 0, 0.0, 0.5).astype(jnp.float32)

    return (w1p.astype(compute_dtype), b1p,
            w2p.astype(compute_dtype), b2p,
            w3p.astype(compute_dtype), b3p,
            act_scale, act_offset)


def reference_forward(x, params):
    """Plain-JAX f32 reference for correctness checking."""
    w1, b1, w2, b2, w3, b3 = params
    h1 = jnp.maximum(x @ w1 + b1, 0.0)
    h2 = jnp.maximum(h1 @ w2 + b2, 0.0)
    z = h2 @ w3 + b3
    return jnp.concatenate(
        [jnp.tanh(z[:, :1]), jax.nn.sigmoid(z[:, 1:2]), jax.nn.sigmoid(z[:, 2:3])],
        axis=1,
    )


if __name__ == "__main__":
    key = jax.random.PRNGKey(0)
    kx, kp, kx2 = jax.random.split(key, 3)

    params = init_params(kp)
    kparams = prepare_params(params)

    # Small single-tile case (B=8, one grid step).
    x = jax.random.normal(kx, (8, STATE_SIZE), jnp.float32)
    out = jax.block_until_ready(actor_forward(x, kparams))
    ref = reference_forward(x, params)
    assert out.shape == (8, 3)
    # bf16 matmul operands / bf16 output -> looser tolerance than pure f32.
    assert jnp.allclose(out, ref, atol=8e-3, rtol=0.0), "mismatch vs reference (B=8)"

    # Multi-tile case with an explicit small tile (4 tiles of 64, exercises padding).
    x2 = jax.random.normal(kx2, (200, STATE_SIZE), jnp.float32)
    out2 = jax.block_until_ready(actor_forward(x2, kparams, tile_b=64))
    ref2 = reference_forward(x2, params)
    assert out2.shape == (200, 3)
    assert jnp.allclose(out2, ref2, atol=8e-3, rtol=0.0), "mismatch vs reference (B=200)"

    # Default tile path: B=200 splits into 2 grid steps (both v7x cores busy).
    out3 = jax.block_until_ready(actor_forward(x2, kparams))
    assert out3.shape == (200, 3)
    assert jnp.allclose(out3, ref2, atol=8e-3, rtol=0.0), "mismatch vs reference (default tile)"

    print("KERNEL_OK")
</pallas_src>

<mosaic_0001>
module attributes {stable_mosaic.version = 11 : i64} {
  func.func @actor_kernel(%arg0: i32, %arg1: memref<8x32xbf16, #tpu.memory_space<vmem>>, %arg2: memref<32x384xbf16, #tpu.memory_space<vmem>>, %arg3: memref<1x384xf32, #tpu.memory_space<vmem>>, %arg4: memref<384x640xbf16, #tpu.memory_space<vmem>>, %arg5: memref<1x640xf32, #tpu.memory_space<vmem>>, %arg6: memref<640x128xbf16, #tpu.memory_space<vmem>>, %arg7: memref<1x128xf32, #tpu.memory_space<vmem>>, %arg8: memref<1x128xf32, #tpu.memory_space<vmem>>, %arg9: memref<1x128xf32, #tpu.memory_space<vmem>>, %arg10: memref<8x128xbf16, #tpu.memory_space<vmem>>) attributes {dimension_semantics = [#tpu.dimension_semantics<parallel>], iteration_bounds = array<i64: 1>, scalar_prefetch = 0 : i64, scratch_operands = 0 : i64, tpu.core_type = #tpu.core_type<tc>, window_params = [{transform_indices = @transform_0, window_bounds = array<i64: 8, 32>}, {pipeline_mode = #tpu.pipeline_mode<synchronous>, transform_indices = @transform_1, window_bounds = array<i64: 32, 384>}, {pipeline_mode = #tpu.pipeline_mode<synchronous>, transform_indices = @transform_2, window_bounds = array<i64: 1, 384>}, {pipeline_mode = #tpu.pipeline_mode<synchronous>, transform_indices = @transform_3, window_bounds = array<i64: 384, 640>}, {pipeline_mode = #tpu.pipeline_mode<synchronous>, transform_indices = @transform_4, window_bounds = array<i64: 1, 640>}, {pipeline_mode = #tpu.pipeline_mode<synchronous>, transform_indices = @transform_5, window_bounds = array<i64: 640, 128>}, {pipeline_mode = #tpu.pipeline_mode<synchronous>, transform_indices = @transform_6, window_bounds = array<i64: 1, 128>}, {pipeline_mode = #tpu.pipeline_mode<synchronous>, transform_indices = @transform_7, window_bounds = array<i64: 1, 128>}, {pipeline_mode = #tpu.pipeline_mode<synchronous>, transform_indices = @transform_8, window_bounds = array<i64: 1, 128>}, {transform_indices = @transform_9, window_bounds = array<i64: 8, 128>}]} {
    %c0 = arith.constant 0 : index
    %c0_0 = arith.constant 0 : index
    %0 = vector.load %arg1[%c0, %c0_0] : memref<8x32xbf16, #tpu.memory_space<vmem>>, vector<8x32xbf16>
    %c0_1 = arith.constant 0 : index
    %c0_2 = arith.constant 0 : index
    %1 = vector.load %arg2[%c0_1, %c0_2] : memref<32x384xbf16, #tpu.memory_space<vmem>>, vector<32x384xbf16>
    %cst = arith.constant dense<0.000000e+00> : vector<8x384xf32>
    %2 = tpu.matmul %0, %1, %cst {dimension_numbers = #tpu.dot_dimension_numbers<[1], [0], [0], [1], [0, 0, 1, 1], [], []>} : vector<8x32xbf16>, vector<32x384xbf16>, vector<8x384xf32> -> vector<8x384xf32>
    %c0_3 = arith.constant 0 : index
    %c0_4 = arith.constant 0 : index
    %3 = vector.load %arg3[%c0_3, %c0_4] : memref<1x384xf32, #tpu.memory_space<vmem>>, vector<1x384xf32>
    %4 = vector.broadcast %3 : vector<1x384xf32> to vector<8x384xf32>
    %5 = arith.addf %2, %4 : vector<8x384xf32>
    %cst_5 = arith.constant 0.000000e+00 : f32
    %6 = vector.broadcast %cst_5 : f32 to vector<8x384xf32>
    %7 = arith.maximumf %5, %6 : vector<8x384xf32>
    %8 = arith.truncf %7 : vector<8x384xf32> to vector<8x384xbf16>
    %c0_6 = arith.constant 0 : index
    %c0_7 = arith.constant 0 : index
    %9 = vector.load %arg4[%c0_6, %c0_7] : memref<384x640xbf16, #tpu.memory_space<vmem>>, vector<384x640xbf16>
    %cst_8 = arith.constant dense<0.000000e+00> : vector<8x640xf32>
    %10 = tpu.matmul %8, %9, %cst_8 {dimension_numbers = #tpu.dot_dimension_numbers<[1], [0], [0], [1], [0, 0, 1, 1], [], []>} : vector<8x384xbf16>, vector<384x640xbf16>, vector<8x640xf32> -> vector<8x640xf32>
    %c0_9 = arith.constant 0 : index
    %c0_10 = arith.constant 0 : index
    %11 = vector.load %arg5[%c0_9, %c0_10] : memref<1x640xf32, #tpu.memory_space<vmem>>, vector<1x640xf32>
    %12 = vector.broadcast %11 : vector<1x640xf32> to vector<8x640xf32>
    %13 = arith.addf %10, %12 : vector<8x640xf32>
    %cst_11 = arith.constant 0.000000e+00 : f32
    %14 = vector.broadcast %cst_11 : f32 to vector<8x640xf32>
    %15 = arith.maximumf %13, %14 : vector<8x640xf32>
    %16 = arith.truncf %15 : vector<8x640xf32> to vector<8x640xbf16>
    %c0_12 = arith.constant 0 : index
    %c0_13 = arith.constant 0 : index
    %17 = vector.load %arg6[%c0_12, %c0_13] : memref<640x128xbf16, #tpu.memory_space<vmem>>, vector<640x128xbf16>
    %cst_14 = arith.constant dense<0.000000e+00> : vector<8x128xf32>
    %18 = tpu.matmul %16, %17, %cst_14 {dimension_numbers = #tpu.dot_dimension_numbers<[1], [0], [0], [1], [0, 0, 1, 1], [], []>} : vector<8x640xbf16>, vector<640x128xbf16>, vector<8x128xf32> -> vector<8x128xf32>
    %c0_15 = arith.constant 0 : index
    %c0_16 = arith.constant 0 : index
    %19 = vector.load %arg7[%c0_15, %c0_16] : memref<1x128xf32, #tpu.memory_space<vmem>>, vector<1x128xf32>
    %20 = vector.broadcast %19 : vector<1x128xf32> to vector<8x128xf32>
    %21 = arith.addf %18, %20 : vector<8x128xf32>
    %c0_17 = arith.constant 0 : index
    %c0_18 = arith.constant 0 : index
    %22 = vector.load %arg8[%c0_17, %c0_18] : memref<1x128xf32, #tpu.memory_space<vmem>>, vector<1x128xf32>
    %23 = vector.broadcast %22 : vector<1x128xf32> to vector<8x128xf32>
    %24 = arith.mulf %21, %23 : vector<8x128xf32>
    %25 = math.tanh %24 : vector<8x128xf32>
    %26 = vector.broadcast %22 : vector<1x128xf32> to vector<8x128xf32>
    %27 = arith.mulf %25, %26 : vector<8x128xf32>
    %c0_19 = arith.constant 0 : index
    %c0_20 = arith.constant 0 : index
    %28 = vector.load %arg9[%c0_19, %c0_20] : memref<1x128xf32, #tpu.memory_space<vmem>>, vector<1x128xf32>
    %29 = vector.broadcast %28 : vector<1x128xf32> to vector<8x128xf32>
    %30 = arith.addf %27, %29 : vector<8x128xf32>
    %31 = arith.truncf %30 : vector<8x128xf32> to vector<8x128xbf16>
    %c0_21 = arith.constant 0 : index
    %c0_22 = arith.constant 0 : index
    %32 = vector.load %arg10[%c0_21, %c0_22] : memref<8x128xbf16, #tpu.memory_space<vmem>>, vector<8x128xbf16>
    tpu.vector_store %arg10[%c0_21, %c0_22], %31 {strides = array<i32>} : memref<8x128xbf16, #tpu.memory_space<vmem>>, vector<8x128xbf16>,
    return
  }
  func.func @transform_0(%arg0: i32) -> (i32, i32) {
    %c0_i32 = arith.constant 0 : i32
    %c0_i32_0 = arith.constant 0 : i32
    return %arg0, %c0_i32 : i32, i32
  }
  func.func @transform_1(%arg0: i32) -> (i32, i32) {
    %c0_i32 = arith.constant 0 : i32
    %c0_i32_0 = arith.constant 0 : i32
    %c0_i32_1 = arith.constant 0 : i32
    return %c0_i32, %c0_i32_0 : i32, i32
  }
  func.func @transform_2(%arg0: i32) -> (i32, i32) {
    %c0_i32 = arith.constant 0 : i32
    %c0_i32_0 = arith.constant 0 : i32
    %c0_i32_1 = arith.constant 0 : i32
    return %c0_i32, %c0_i32_0 : i32, i32
  }
  func.func @transform_3(%arg0: i32) -> (i32, i32) {
    %c0_i32 = arith.constant 0 : i32
    %c0_i32_0 = arith.constant 0 : i32
    %c0_i32_1 = arith.constant 0 : i32
    return %c0_i32, %c0_i32_0 : i32, i32
  }
  func.func @transform_4(%arg0: i32) -> (i32, i32) {
    %c0_i32 = arith.constant 0 : i32
    %c0_i32_0 = arith.constant 0 : i32
    %c0_i32_1 = arith.constant 0 : i32
    return %c0_i32, %c0_i32_0 : i32, i32
  }
  func.func @transform_5(%arg0: i32) -> (i32, i32) {
    %c0_i32 = arith.constant 0 : i32
    %c0_i32_0 = arith.constant 0 : i32
    %c0_i32_1 = arith.constant 0 : i32
    return %c0_i32, %c0_i32_0 : i32, i32
  }
  func.func @transform_6(%arg0: i32) -> (i32, i32) {
    %c0_i32 = arith.constant 0 : i32
    %c0_i32_0 = arith.constant 0 : i32
    %c0_i32_1 = arith.constant 0 : i32
    return %c0_i32, %c0_i32_0 : i32, i32
  }
  func.func @transform_7(%arg0: i32) -> (i32, i32) {
    %c0_i32 = arith.constant 0 : i32
    %c0_i32_0 = arith.constant 0 : i32
    %c0_i32_1 = arith.constant 0 : i32
    return %c0_i32, %c0_i32_0 : i32, i32
  }
  func.func @transform_8(%arg0: i32) -> (i32, i32) {
    %c0_i32 = arith.constant 0 : i32
    %c0_i32_0 = arith.constant 0 : i32
    %c0_i32_1 = arith.constant 0 : i32
    return %c0_i32, %c0_i32_0 : i32, i32
  }
  func.func @transform_9(%arg0: i32) -> (i32, i32) {
    %c0_i32 = arith.constant 0 : i32
    %c0_i32_0 = arith.constant 0 : i32
    return %arg0, %c0_i32 : i32, i32
  }
}

</mosaic_0001>

<bundles_post_ra>
// kernel: actor_forward.1
= control target key start
LH: loop header
LB: loop body
LE: loop exit
PB: predicated region body
PF: predicated region fallthrough
CT: control target
= control target key end

     0   :  { %14 = vsyncpa [#allocation3], 0  ;;  %s2615_s0 = inlined_call_operand.vmem [shape: bf16[8,32], index: 0, kind: input, shape index: {}]   ;;  %s2616_s1 = inlined_call_operand.hbm [shape: bf16[32,384], index: 1, kind: input, shape index: {}]   ;;  %s2617_s2 = inlined_call_operand.vmem [shape: f32[1,384], index: 2, kind: input, shape index: {}]   ;;  %s2618_s3 = inlined_call_operand.hbm [shape: bf16[384,640], index: 3, kind: input, shape index: {}]   ;;  %s2619_s4 = inlined_call_operand.vmem [shape: f32[1,640], index: 4, kind: input, shape index: {}]   ;;  %s2620_s5 = inlined_call_operand.hbm [shape: bf16[640,128], index: 5, kind: input, shape index: {}]   ;;  %s2621_s6 = inlined_call_operand.vmem [shape: f32[1,128], index: 6, kind: input, shape index: {}]   ;;  %s2622_s7 = inlined_call_operand.vmem [shape: f32[1,128], index: 7, kind: input, shape index: {}]   ;;  %s2623_s8 = inlined_call_operand.vmem [shape: f32[1,128], index: 8, kind: input, shape index: {}]   ;;  %s2624_s9 = inlined_call_operand.vmem [shape: bf16[8,128], index: 9, kind: output, shape index: {}]  }
   0x1   :  { %15 = vsyncpa [#allocation5], 0  ;;  %s37_s11 = sshll.u32 %s2618_s3, 4  ;;  %s2495_s12 = smov [#allocation4]   ;;  %s38_s11 = int_to_ptr.hbm [resolvable:$true] %s37_s11 }
   0x2   :  { %s39_s13 = sshll.u32 %s2495_s12, 4  ;;  %s22_s16 = sshll.u32 %s2616_s1, 4  ;;  %s40_s13 = int_to_ptr.vmem [resolvable:$true] %s39_s13  ;;  %s23_s16 = int_to_ptr.hbm [resolvable:$true] %s22_s16 }
   0x3   :  { %s2496_s17 = smov 320   ;;  %s2497_s18 = smov 20  }
   0x4   :  { %45 = dma.hbm_to_vmem [thread:$0]  %s38_s11, 15360, %s40_s13, [#allocation5], %s2496_s17, %s2496_s17, %s2497_s18  }
   0x5   :  { %s2498_s19 = smov [#allocation2]   ;;  %s2499_s21 = smov 192  }
   0x6   :  { %s24_s20 = sshll.u32 %s2498_s19, 4  ;;  %s2500_s22 = smov 12   ;;  %s25_s20 = int_to_ptr.vmem [resolvable:$true] %s24_s20 }
   0x7   :  { %30 = dma.hbm_to_vmem [thread:$0]  %s23_s16, 768, %s25_s20, [#allocation3], %s2499_s21, %s2499_s21, %s2500_s22  }
   0x8   :  { %s52_s24 = sshll.u32 %s2620_s5, 4  ;;  %s2501_s25 = smov [#allocation6]   ;;  %s53_s24 = int_to_ptr.hbm [resolvable:$true] %s52_s24 }
   0x9   :  { %s54_s26 = sshll.u32 %s2501_s25, 4  ;;  %s2502_s27 = smov 64   ;;  %s55_s26 = int_to_ptr.vmem [resolvable:$true] %s54_s26 }
   0xa   :  { %s2503_s1 = smov 4  }
   0xb   :  { %60 = dma.hbm_to_vmem [thread:$0]  %s53_s24, 5120, %s55_s26, [#allocation5], %s2502_s27, %s2502_s27, %s2503_s1  }
   0xc   :  { %2491 = dma.done.wait [#allocation3], 768  }
   0xd   :  { %2492 = vsyncadd [#allocation3], 4294966528 }
   0xe   :  { %2493 = dma.done.wait [#allocation5], 20480  }
   0xf   :  { %2494 = vsyncadd [#allocation5], 4294946816  ;;  %v1586_v0 = vld [vmem:[#allocation2 + $0x18] sm:$0xf]  ;;  %v2243_v1 = vld [vmem:[#allocation2 + $0x20] sm:$0xf0] }
  0x10   :  { %v2242_v2 = vld [vmem:[#allocation2 + $0x1c] sm:$0xf]  ;;  %v1587_v3 = vor.u32 %v2243_v1, %v1586_v0  ;;  %v1588_v4 = vld [vmem:[#allocation2 + $0x24] sm:$0xf0]  ;;  %v1594_v5 = vld [vmem:[#allocation2 + $0x20] sm:$0xf] }
  0x11   :  { %v2244_v6 = vld [vmem:[#allocation2 + $0x28] sm:$0xf0]  ;;  %v1591_v7 = vor.u32 %v2242_v2, %v1588_v4  ;;  %v1574_v9 = vld [vmem:[#allocation2] sm:$0xf]  ;;  %v2239_v11 = vld [vmem:[#allocation2 + $0x4] sm:$0xf] }
  0x12   :  { %v1595_v8 = vor.u32 %v2244_v6, %v1594_v5  ;;  %v2240_v10 = vld [vmem:[#allocation2 + $0x8] sm:$0xf0]  ;;  %139 = vmatpush.bf16.msra.mxu0 %v1587_v3  ;;  %v1576_v13 = vld [vmem:[#allocation2 + $0xc] sm:$0xf0]  ;;  %v1582_v14 = vld [vmem:[#allocation2 + $0x8] sm:$0xf] }
  0x13   :  { %v1575_v12 = vor.u32 %v2240_v10, %v1574_v9  ;;  %v2241_v15 = vld [vmem:[#allocation2 + $0x10] sm:$0xf0]  ;;  %152 = vmatpush.bf16.msra.mxu1 %v1591_v7  ;;  %v1579_v16 = vor.u32 %v2239_v11, %v1576_v13  ;;  %vm129_vm0 = vcmask 261120   ;;  %v1741_v18 = vld [vmem:[#allocation4 + $0x118] sm:$0xf] }
  0x14   :  { %165 = vmatpush.bf16.msra.mxu2 %v1595_v8  ;;  %v1583_v17 = vor.u32 %v2241_v15, %v1582_v14  ;;  %v2282_v19 = vld [vmem:[#allocation4 + $0x128] sm:$0xf0]  ;;  %v80_v20 = vld [vmem:[%s2615_s0] sm:$0xf]  ;;  %v1901_v22 = vld [vmem:[#allocation4 + $0x258] sm:$0xf] }
  0x15   :  { %v1742_v21 = vor.u32 %v2282_v19, %v1741_v18  ;;  %v2322_v23 = vld [vmem:[#allocation4 + $0x268] sm:$0xf0]  ;;  %v2280_v24 = vld [vmem:[#allocation4 + $0x11c] sm:$0xf]  ;;  %v1743_v26 = vld [vmem:[#allocation4 + $0x12c] sm:$0xf0] }
  0x16   :  { %v1902_v25 = vor.u32 %v2322_v23, %v1901_v22  ;;  %v1721_v27 = vld [vmem:[#allocation4 + $0xf0] sm:$0xf]  ;;  %v2277_v28 = vld [vmem:[#allocation4 + $0x100] sm:$0xf0]  ;;  %140 = vmatpush.bf16.msra.mxu0 %v1575_v12  ;;  %v1746_v29 = vor.u32 %v2280_v24, %v1743_v26  ;;  %v2275_v32 = vld [vmem:[#allocation4 + $0xf4] sm:$0xf] }
  0x17   :  { %958 = vmatpush.bf16.msra.mxu3 %v1742_v21  ;;  %v1881_v30 = vld [vmem:[#allocation4 + $0x230] sm:$0xf]  ;;  %v2317_v31 = vld [vmem:[#allocation4 + $0x240] sm:$0xf0]  ;;  %153 = vmatpush.bf16.msra.mxu1 %v1579_v16  ;;  %v1722_v33 = vor.u32 %v2277_v28, %v1721_v27  ;;  %v1723_v34 = vld [vmem:[#allocation4 + $0x104] sm:$0xf0] }
  0x18   :  { %166 = vmatpush.bf16.msra.mxu2 %v1583_v17  ;;  %v2061_v35 = vld [vmem:[#allocation4 + $0x398] sm:$0xf]  ;;  %v2362_v36 = vld [vmem:[#allocation4 + $0x3a8] sm:$0xf0]  ;;  %v1882_v37 = vor.u32 %v2317_v31, %v1881_v30  ;;  %v1726_v38 = vor.u32 %v2275_v32, %v1723_v34  ;;  %v1701_v40 = vld [vmem:[#allocation4 + $0xc8] sm:$0xf] }
  0x19   :  { %v2062_v39 = vor.u32 %v2362_v36, %v2061_v35  ;;  %v2272_v41 = vld [vmem:[#allocation4 + $0xd8] sm:$0xf0]  ;;  %v1861_v42 = vld [vmem:[#allocation4 + $0x208] sm:$0xf]  ;;  %1596 = vmatmul.msk.bf16.vlgmr.msra.gmra.mxu0 %vm129_vm0, %v80_v20  ;;  %v2270_v44 = vld [vmem:[#allocation4 + $0xcc] sm:$0xf] }
  0x1a   :  { %971 = vmatpush.bf16.msrb.mxu0 %v1902_v25  ;;  %v2312_v43 = vld [vmem:[#allocation4 + $0x218] sm:$0xf0]  ;;  %v1703_v45 = vld [vmem:[#allocation4 + $0xdc] sm:$0xf0]  ;;  %1597 = vmatmul.msk.bf16.vlgmr.msra.gmra.mxu1 %vm129_vm0, %v80_v20  ;;  %v2041_v46 = vld [vmem:[#allocation4 + $0x370] sm:$0xf]  ;;  %v1702_v48 = vor.u32 %v2272_v41, %v1701_v40 }
  0x1b   :  { %1598 = vmatmul.msk.bf16.vlgmr.msra.gmra.mxu2 %vm129_vm0, %v80_v20  ;;  %v2357_v47 = vld [vmem:[#allocation4 + $0x380] sm:$0xf0]  ;;  %959 = vmatpush.bf16.msra.mxu3 %v1722_v33  ;;  %v1681_v50 = vld [vmem:[#allocation4 + $0xa0] sm:$0xf]  ;;  %v2267_v51 = vld [vmem:[#allocation4 + $0xb0] sm:$0xf0]  ;;  %v1862_v52 = vor.u32 %v2312_v43, %v1861_v42  ;;  %v1706_v53 = vor.u32 %v2270_v44, %v1703_v45 }
  0x1c   :  { %997 = vmatpush.bf16.msrb.mxu2 %v1746_v29  ;;  %984 = vmatpush.bf16.msrb.mxu1 %v2062_v39  ;;  %v2042_v49 = vor.u32 %v2357_v47, %v2041_v46  ;;  %v1841_v54 = vld [vmem:[#allocation4 + $0x1e0] sm:$0xf]  ;;  %v2307_v55 = vld [vmem:[#allocation4 + $0x1f0] sm:$0xf0]  ;;  %v2021_v56 = vld [vmem:[#allocation4 + $0x348] sm:$0xf]  ;;  %v1682_v60 = vor.u32 %v2267_v51, %v1681_v50 }
  0x1d   :  { %v2265_v57 = vld [vmem:[#allocation4 + $0xa4] sm:$0xf]  ;;  %v1683_v58 = vld [vmem:[#allocation4 + $0xb4] sm:$0xf0]  ;;  %v2352_v59 = vld [vmem:[#allocation4 + $0x358] sm:$0xf0]  ;;  %v1842_v0 = vor.u32 %v2307_v55, %v1841_v54 }
  0x1e   :  { %972 = vmatpush.bf16.msrb.mxu0 %v1882_v37  ;;  %v2022_v61 = vor.u32 %v2352_v59, %v2021_v56  ;;  %v1661_v62 = vld [vmem:[#allocation4 + $0x78] sm:$0xf]  ;;  %v2262_v63 = vld [vmem:[#allocation4 + $0x88] sm:$0xf0]  ;;  %v1686_v1 = vor.u32 %v2265_v57, %v1683_v58  ;;  %v2001_v3 = vld [vmem:[#allocation4 + $0x320] sm:$0xf] }
  0x1f   :  { %960 = vmatpush.bf16.msra.mxu3 %v1702_v48  ;;  %v1821_v2 = vld [vmem:[#allocation4 + $0x1b8] sm:$0xf]  ;;  %v2347_v4 = vld [vmem:[#allocation4 + $0x330] sm:$0xf0]  ;;  %v2302_v5 = vld [vmem:[#allocation4 + $0x1c8] sm:$0xf0]  ;;  %v1662_v8 = vor.u32 %v2262_v63, %v1661_v62 }
  0x20   :  { %998 = vmatpush.bf16.msrb.mxu2 %v1726_v38  ;;  %985 = vmatpush.bf16.msrb.mxu1 %v2042_v49  ;;  %v2260_v6 = vld [vmem:[#allocation4 + $0x7c] sm:$0xf]  ;;  %v1663_v7 = vld [vmem:[#allocation4 + $0x8c] sm:$0xf0]  ;;  %v2002_v9 = vor.u32 %v2347_v4, %v2001_v3  ;;  %v2257_v11 = vld [vmem:[#allocation4 + $0x60] sm:$0xf0]  ;;  %v1822_v12 = vor.u32 %v2302_v5, %v1821_v2 }
  0x21   :  { %v1641_v10 = vld [vmem:[#allocation4 + $0x50] sm:$0xf]  ;;  %v1666_v13 = vor.u32 %v2260_v6, %v1663_v7  ;;  %v1981_v15 = vld [vmem:[#allocation4 + $0x2f8] sm:$0xf]  ;;  %v2342_v16 = vld [vmem:[#allocation4 + $0x308] sm:$0xf0] }
  0x22   :  { %973 = vmatpush.bf16.msrb.mxu0 %v1862_v52  ;;  %v1801_v14 = vld [vmem:[#allocation4 + $0x190] sm:$0xf]  ;;  %v2297_v17 = vld [vmem:[#allocation4 + $0x1a0] sm:$0xf0]  ;;  %v2255_v18 = vld [vmem:[#allocation4 + $0x54] sm:$0xf]  ;;  %v1642_v20 = vor.u32 %v2257_v11, %v1641_v10  ;;  %v1982_v21 = vor.u32 %v2342_v16, %v1981_v15 }
  0x23   :  { %961 = vmatpush.bf16.msra.mxu3 %v1682_v60  ;;  %v1643_v19 = vld [vmem:[#allocation4 + $0x64] sm:$0xf0]  ;;  %v2252_v23 = vld [vmem:[#allocation4 + $0x38] sm:$0xf0]  ;;  %v1802_v24 = vor.u32 %v2297_v17, %v1801_v14  ;;  %v1961_v27 = vld [vmem:[#allocation4 + $0x2d0] sm:$0xf] }
  0x24   :  { %999 = vmatpush.bf16.msrb.mxu2 %v1706_v53  ;;  %986 = vmatpush.bf16.msrb.mxu1 %v2022_v61  ;;  %v1621_v22 = vld [vmem:[#allocation4 + $0x28] sm:$0xf]  ;;  %v1646_v25 = vor.u32 %v2255_v18, %v1643_v19  ;;  %v2337_v28 = vld [vmem:[#allocation4 + $0x2e0] sm:$0xf0]  ;;  %v2292_v29 = vld [vmem:[#allocation4 + $0x178] sm:$0xf0] }
  0x25   :  { %v1781_v26 = vld [vmem:[#allocation4 + $0x168] sm:$0xf]  ;;  %v2250_v30 = vld [vmem:[#allocation4 + $0x2c] sm:$0xf]  ;;  %v1623_v31 = vld [vmem:[#allocation4 + $0x3c] sm:$0xf0]  ;;  %v1622_v32 = vor.u32 %v2252_v23, %v1621_v22  ;;  %v1962_v33 = vor.u32 %v2337_v28, %v1961_v27 }
  0x26   :  { %974 = vmatpush.bf16.msrb.mxu0 %v1842_v0  ;;  %v1601_v34 = vld [vmem:[#allocation4] sm:$0xf]  ;;  %v2247_v35 = vld [vmem:[#allocation4 + $0x10] sm:$0xf0]  ;;  %v1782_v37 = vor.u32 %v2292_v29, %v1781_v26  ;;  %v1626_v38 = vor.u32 %v2250_v30, %v1623_v31  ;;  %v1941_v40 = vld [vmem:[#allocation4 + $0x2a8] sm:$0xf] }
  0x27   :  { %962 = vmatpush.bf16.msra.mxu3 %v1662_v8  ;;  %v1761_v36 = vld [vmem:[#allocation4 + $0x140] sm:$0xf]  ;;  %v2287_v39 = vld [vmem:[#allocation4 + $0x150] sm:$0xf0]  ;;  %v2332_v41 = vld [vmem:[#allocation4 + $0x2b8] sm:$0xf0]  ;;  %v1602_v48 = vor.u32 %v2247_v35, %v1601_v34 }
  0x28   :  { %1000 = vmatpush.bf16.msrb.mxu2 %v1686_v1  ;;  %987 = vmatpush.bf16.msrb.mxu1 %v2002_v9  ;;  %v2245_v42 = vld [vmem:[#allocation4 + $0x4] sm:$0xf]  ;;  %v1603_v43 = vld [vmem:[#allocation4 + $0x14] sm:$0xf0]  ;;  %v2320_v44 = vld [vmem:[#allocation4 + $0x25c] sm:$0xf]  ;;  %v1942_v49 = vor.u32 %v2332_v41, %v1941_v40  ;;  %v1762_v52 = vor.u32 %v2287_v39, %v1761_v36 }
  0x29   :  { %v1903_v45 = vld [vmem:[#allocation4 + $0x26c] sm:$0xf0]  ;;  %v2360_v46 = vld [vmem:[#allocation4 + $0x39c] sm:$0xf]  ;;  %v1909_v50 = vld [vmem:[#allocation4 + $0x260] sm:$0xf]  ;;  %v1606_v53 = vor.u32 %v2245_v42, %v1603_v43 }
  0x2a   :  { %975 = vmatpush.bf16.msrb.mxu0 %v1822_v12  ;;  %v2063_v47 = vld [vmem:[#allocation4 + $0x3ac] sm:$0xf0]  ;;  %v2323_v51 = vld [vmem:[#allocation4 + $0x270] sm:$0xf0]  ;;  %v1921_v54 = vld [vmem:[#allocation4 + $0x280] sm:$0xf]  ;;  %v1906_v56 = vor.u32 %v2320_v44, %v1903_v45 }
  0x2b   :  { %963 = vmatpush.bf16.msra.mxu3 %v1642_v20  ;;  %v2327_v55 = vld [vmem:[#allocation4 + $0x290] sm:$0xf0]  ;;  %v2066_v57 = vor.u32 %v2360_v46, %v2063_v47  ;;  %v1749_v59 = vld [vmem:[#allocation4 + $0x120] sm:$0xf]  ;;  %v1910_v61 = vor.u32 %v2323_v51, %v1909_v50  ;;  %v1883_v62 = vld [vmem:[#allocation4 + $0x244] sm:$0xf0] }
  0x2c   :  { %1001 = vmatpush.bf16.msrb.mxu2 %v1666_v13  ;;  %988 = vmatpush.bf16.msrb.mxu1 %v1982_v21  ;;  %v2315_v58 = vld [vmem:[#allocation4 + $0x234] sm:$0xf]  ;;  %v2043_v0 = vld [vmem:[#allocation4 + $0x384] sm:$0xf0]  ;;  %v1922_v1 = vor.u32 %v2327_v55, %v1921_v54  ;;  %v1889_v2 = vld [vmem:[#allocation4 + $0x238] sm:$0xf] }
  0x2d   :  { %v2283_v60 = vld [vmem:[#allocation4 + $0x130] sm:$0xf0]  ;;  %v2318_v3 = vld [vmem:[#allocation4 + $0x248] sm:$0xf0]  ;;  %v1886_v5 = vor.u32 %v2315_v58, %v1883_v62  ;;  %v1729_v8 = vld [vmem:[#allocation4 + $0xf8] sm:$0xf] }
  0x2e   :  { %976 = vmatpush.bf16.msrb.mxu0 %v1802_v24  ;;  %v2355_v63 = vld [vmem:[#allocation4 + $0x374] sm:$0xf]  ;;  %v1750_v4 = vor.u32 %v2283_v60, %v1749_v59  ;;  %v2310_v7 = vld [vmem:[#allocation4 + $0x20c] sm:$0xf]  ;;  %v1890_v10 = vor.u32 %v2318_v3, %v1889_v2  ;;  %v1863_v11 = vld [vmem:[#allocation4 + $0x21c] sm:$0xf0] }
  0x2f   :  { %964 = vmatpush.bf16.msra.mxu3 %v1622_v32  ;;  %v2046_v6 = vor.u32 %v2355_v63, %v2043_v0  ;;  %v2278_v9 = vld [vmem:[#allocation4 + $0x108] sm:$0xf0]  ;;  %v2023_v13 = vld [vmem:[#allocation4 + $0x35c] sm:$0xf0]  ;;  %v1869_v14 = vld [vmem:[#allocation4 + $0x210] sm:$0xf]  ;;  %v1866_v17 = vor.u32 %v2310_v7, %v1863_v11 }
  0x30   :  { %1002 = vmatpush.bf16.msrb.mxu2 %v1646_v25  ;;  %989 = vmatpush.bf16.msrb.mxu1 %v1962_v33  ;;  %v2350_v12 = vld [vmem:[#allocation4 + $0x34c] sm:$0xf]  ;;  %v2313_v15 = vld [vmem:[#allocation4 + $0x220] sm:$0xf0]  ;;  %v1730_v16 = vor.u32 %v2278_v9, %v1729_v8  ;;  %v1709_v20 = vld [vmem:[#allocation4 + $0xd0] sm:$0xf] }
  0x31   :  { %v2026_v18 = vor.u32 %v2350_v12, %v2023_v13  ;;  %v2305_v19 = vld [vmem:[#allocation4 + $0x1e4] sm:$0xf]  ;;  %v1870_v22 = vor.u32 %v2313_v15, %v1869_v14  ;;  %v1843_v23 = vld [vmem:[#allocation4 + $0x1f4] sm:$0xf0]  ;;  %v1849_v26 = vld [vmem:[#allocation4 + $0x1e8] sm:$0xf] }
  0x32   :  { %977 = vmatpush.bf16.msrb.mxu0 %v1782_v37  ;;  %v2273_v21 = vld [vmem:[#allocation4 + $0xe0] sm:$0xf0]  ;;  %v2003_v25 = vld [vmem:[#allocation4 + $0x334] sm:$0xf0]  ;;  %v2308_v27 = vld [vmem:[#allocation4 + $0x1f8] sm:$0xf0]  ;;  %v1846_v29 = vor.u32 %v2305_v19, %v1843_v23 }
  0x33   :  { %965 = vmatpush.bf16.msra.mxu3 %v1602_v48  ;;  %v2345_v24 = vld [vmem:[#allocation4 + $0x324] sm:$0xf]  ;;  %v1710_v28 = vor.u32 %v2273_v21, %v1709_v20  ;;  %v2300_v31 = vld [vmem:[#allocation4 + $0x1bc] sm:$0xf]  ;;  %v1689_v32 = vld [vmem:[#allocation4 + $0xa8] sm:$0xf]  ;;  %v1850_v34 = vor.u32 %v2308_v27, %v1849_v26 }
  0x34   :  { %1003 = vmatpush.bf16.msrb.mxu2 %v1626_v38  ;;  %990 = vmatpush.bf16.msrb.mxu1 %v1942_v49  ;;  %v2006_v30 = vor.u32 %v2345_v24, %v2003_v25  ;;  %v2268_v33 = vld [vmem:[#allocation4 + $0xb8] sm:$0xf0]  ;;  %v1823_v35 = vld [vmem:[#allocation4 + $0x1cc] sm:$0xf0]  ;;  %v1829_v38 = vld [vmem:[#allocation4 + $0x1c0] sm:$0xf] }
  0x35   :  { %v2340_v36 = vld [vmem:[#allocation4 + $0x2fc] sm:$0xf]  ;;  %v1983_v37 = vld [vmem:[#allocation4 + $0x30c] sm:$0xf0]  ;;  %v2303_v39 = vld [vmem:[#allocation4 + $0x1d0] sm:$0xf0]  ;;  %v1690_v40 = vor.u32 %v2268_v33, %v1689_v32  ;;  %v1826_v41 = vor.u32 %v2300_v31, %v1823_v35 }
  0x36   :  { %978 = vmatpush.bf16.msrb.mxu0 %v1762_v52  ;;  %v1986_v42 = vor.u32 %v2340_v36, %v1983_v37  ;;  %v2295_v43 = vld [vmem:[#allocation4 + $0x194] sm:$0xf]  ;;  %v1830_v44 = vor.u32 %v2303_v39, %v1829_v38  ;;  %v1803_v45 = vld [vmem:[#allocation4 + $0x1a4] sm:$0xf0]  ;;  %v1809_v48 = vld [vmem:[#allocation4 + $0x198] sm:$0xf] }
  0x37   :  { %1010 = vmatpush.bf16.msrb.mxu3 %v1906_v56  ;;  %v2335_v46 = vld [vmem:[#allocation4 + $0x2d4] sm:$0xf]  ;;  %v1963_v47 = vld [vmem:[#allocation4 + $0x2e4] sm:$0xf0]  ;;  %v2298_v49 = vld [vmem:[#allocation4 + $0x1a8] sm:$0xf0]  ;;  %v1806_v50 = vor.u32 %v2295_v43, %v1803_v45 }
  0x38   :  { %1004 = vmatpush.bf16.msrb.mxu2 %v1606_v53  ;;  %991 = vmatpush.bf16.msrb.mxu1 %v1922_v1  ;;  %v1966_v51 = vor.u32 %v2335_v46, %v1963_v47  ;;  %v1810_v52 = vor.u32 %v2298_v49, %v1809_v48  ;;  %v1669_v53 = vld [vmem:[#allocation4 + $0x80] sm:$0xf]  ;;  %v2263_v54 = vld [vmem:[#allocation4 + $0x90] sm:$0xf0]  ;;  %v2290_v56 = vld [vmem:[#allocation4 + $0x16c] sm:$0xf] }
  0x39   :  { %v1670_v55 = vor.u32 %v2263_v54, %v1669_v53  ;;  %v2330_v59 = vld [vmem:[#allocation4 + $0x2ac] sm:$0xf]  ;;  %v1943_v60 = vld [vmem:[#allocation4 + $0x2bc] sm:$0xf0]  ;;  %v2293_v63 = vld [vmem:[#allocation4 + $0x180] sm:$0xf0] }
  0x3a   :  { %1023 = vmatpush.bf16.msra.mxu0 %v2066_v57  ;;  %v1783_v57 = vld [vmem:[#allocation4 + $0x17c] sm:$0xf0]  ;;  %v1946_v62 = vor.u32 %v2330_v59, %v1943_v60  ;;  %v1649_v0 = vld [vmem:[#allocation4 + $0x58] sm:$0xf]  ;;  %v2258_v1 = vld [vmem:[#allocation4 + $0x68] sm:$0xf0] }
  0x3b   :  { %1011 = vmatpush.bf16.msrb.mxu3 %v1886_v5  ;;  %v1786_v58 = vor.u32 %v2290_v56, %v1783_v57  ;;  %v1650_v3 = vor.u32 %v2258_v1, %v1649_v0  ;;  %v1763_v5 = vld [vmem:[#allocation4 + $0x154] sm:$0xf0]  ;;  %v1769_v9 = vld [vmem:[#allocation4 + $0x148] sm:$0xf]  ;;  %v1629_v13 = vld [vmem:[#allocation4 + $0x30] sm:$0xf] }
  0x3c   :  { %1049 = vmatpush.bf16.msra.mxu2 %v1910_v61  ;;  %1036 = vmatpush.bf16.msra.mxu1 %v1750_v4  ;;  %v1789_v61 = vld [vmem:[#allocation4 + $0x170] sm:$0xf]  ;;  %v2285_v4 = vld [vmem:[#allocation4 + $0x144] sm:$0xf]  ;;  %v1923_v8 = vld [vmem:[#allocation4 + $0x294] sm:$0xf0] }
  0x3d   :  { %v1790_v2 = vor.u32 %v2293_v63, %v1789_v61  ;;  %v1766_v7 = vor.u32 %v2285_v4, %v1763_v5  ;;  %v2253_v14 = vld [vmem:[#allocation4 + $0x40] sm:$0xf0]  ;;  %v89_v19 = vld [vmem:[%s2617_s2] sm:$0x7]  ;;  %v2069_v25 = vld [vmem:[#allocation4 + $0x3a0] sm:$0xf] }
  0x3e   :  { %1024 = vmatpush.bf16.msra.mxu0 %v2046_v6  ;;  %v2325_v6 = vld [vmem:[#allocation4 + $0x284] sm:$0xf]  ;;  %v1630_v15 = vor.u32 %v2253_v14, %v1629_v13  ;;  %v91_v20 = vperm.slane %v89_v19, 0  ;;  %v92_v21 = vperm.slane %v89_v19, 1  ;;  %v2363_v26 = vld [vmem:[#allocation4 + $0x3b0] sm:$0xf0] }
  0x3f   :  { %1012 = vmatpush.bf16.msrb.mxu3 %v1866_v17  ;;  %v1926_v11 = vor.u32 %v2325_v6, %v1923_v8  ;;  %v2248_v17 = vld [vmem:[#allocation4 + $0x18] sm:$0xf0]  ;;  %v2281_v27 = vld [vmem:[#allocation4 + $0x124] sm:$0xf]  ;;  %v2071_v31 = vld [vmem:[#allocation4 + $0x3b4] sm:$0xf0]  ;;  %v2070_v35 = vor.u32 %v2363_v26, %v2069_v25 }
  0x40   :  { %1050 = vmatpush.bf16.msra.mxu2 %v1890_v10  ;;  %1037 = vmatpush.bf16.msra.mxu1 %v1730_v16  ;;  %v2288_v10 = vld [vmem:[#allocation4 + $0x158] sm:$0xf0]  ;;  %v1609_v16 = vld [vmem:[#allocation4 + $0x8] sm:$0xf]  ;;  %v2049_v39 = vld [vmem:[#allocation4 + $0x378] sm:$0xf] }
  0x41   :  { %v1770_v12 = vor.u32 %v2288_v10, %v1769_v9  ;;  %v1731_v43 = vld [vmem:[#allocation4 + $0x10c] sm:$0xf0]  ;;  %v2353_v56 = vld [vmem:[#allocation4 + $0x360] sm:$0xf0]  ;;  %v2271_v57 = vld [vmem:[#allocation4 + $0xd4] sm:$0xf] }
  0x42   :  { %1025 = vmatpush.bf16.msra.mxu0 %v2026_v18  ;;  %v1610_v18 = vor.u32 %v2248_v17, %v1609_v16  ;;  %v2051_v45 = vld [vmem:[#allocation4 + $0x38c] sm:$0xf0]  ;;  %v2351_v60 = vld [vmem:[#allocation4 + $0x354] sm:$0xf]  ;;  %v2031_v61 = vld [vmem:[#allocation4 + $0x364] sm:$0xf0] }
  0x43   :  { %1013 = vmatpush.bf16.msrb.mxu3 %v1846_v29  ;;  %v1751_v29 = vld [vmem:[#allocation4 + $0x134] sm:$0xf0]  ;;  %v2316_v1 = vld [vmem:[#allocation4 + $0x23c] sm:$0xf]  ;;  %v2034_v4 = vor.u32 %v2351_v60, %v2031_v61  ;;  %v2009_v5 = vld [vmem:[#allocation4 + $0x328] sm:$0xf] }
  0x44   :  { %1051 = vmatpush.bf16.msra.mxu2 %v1870_v22  ;;  %1038 = vmatpush.bf16.msra.mxu1 %v1710_v28  ;;  %v1754_v37 = vor.u32 %v2281_v27, %v1751_v29  ;;  %v2348_v6 = vld [vmem:[#allocation4 + $0x338] sm:$0xf0]  ;;  %v1691_v8 = vld [vmem:[#allocation4 + $0xbc] sm:$0xf0]  ;;  %v2346_v9 = vld [vmem:[#allocation4 + $0x32c] sm:$0xf] }
  0x45   :  { %v2011_v10 = vld [vmem:[#allocation4 + $0x33c] sm:$0xf0]  ;;  %v2010_v13 = vor.u32 %v2348_v6, %v2009_v5  ;;  %v2311_v14 = vld [vmem:[#allocation4 + $0x214] sm:$0xf]  ;;  %v2306_v25 = vld [vmem:[#allocation4 + $0x1ec] sm:$0xf] }
  0x46   :  { %1026 = vmatpush.bf16.msra.mxu0 %v2006_v30  ;;  %v2361_v30 = vld [vmem:[#allocation4 + $0x3a4] sm:$0xf]  ;;  %v2014_v17 = vor.u32 %v2346_v9, %v2011_v10  ;;  %v1851_v26 = vld [vmem:[#allocation4 + $0x1fc] sm:$0xf0]  ;;  %v1969_v29 = vld [vmem:[#allocation4 + $0x2d8] sm:$0xf] }
  0x47   :  { %1014 = vmatpush.bf16.msrb.mxu3 %v1826_v41  ;;  %v2074_v38 = vor.u32 %v2361_v30, %v2071_v31  ;;  %v2276_v41 = vld [vmem:[#allocation4 + $0xfc] sm:$0xf]  ;;  %v2338_v31 = vld [vmem:[#allocation4 + $0x2e8] sm:$0xf0]  ;;  %v1931_v61 = vld [vmem:[#allocation4 + $0x29c] sm:$0xf0] }
  0x48   :  { %1052 = vmatpush.bf16.msra.mxu2 %v1850_v34  ;;  %1039 = vmatpush.bf16.msra.mxu1 %v1690_v40  ;;  %v93_v34 = vperm.slane %v89_v19, 2  ;;  %v2358_v40 = vld [vmem:[#allocation4 + $0x388] sm:$0xf0]  ;;  %v1734_v54 = vor.u32 %v2276_v41, %v1731_v43  ;;  %v2343_v19 = vld [vmem:[#allocation4 + $0x310] sm:$0xf0] }
  0x49   :  { %v2050_v49 = vor.u32 %v2358_v40, %v2049_v39  ;;  %v1831_v39 = vld [vmem:[#allocation4 + $0x1d4] sm:$0xf0]  ;;  %v1970_v40 = vor.u32 %v2338_v31, %v1969_v29  ;;  %v1949_v43 = vld [vmem:[#allocation4 + $0x2b0] sm:$0xf]  ;;  %v2326_v60 = vld [vmem:[#allocation4 + $0x28c] sm:$0xf] }
  0x4a   :  { %1027 = vmatpush.bf16.msra.mxu0 %v1986_v42  ;;  %v1791_v5 = vld [vmem:[#allocation4 + $0x184] sm:$0xf0]  ;;  %v2359_v29 = vld [vmem:[#allocation4 + $0x390] sm:$0xf0] }
  0x4b   :  { %1015 = vmatpush.bf16.msrb.mxu3 %v1806_v50  ;;  %v2321_v50 = vld [vmem:[#allocation4 + $0x264] sm:$0xf] }
  0x4c   :  { %1053 = vmatpush.bf16.msra.mxu2 %v1830_v44  ;;  %1040 = vmatpush.bf16.msra.mxu1 %v1670_v55  ;;  %v2356_v44 = vld [vmem:[#allocation4 + $0x37c] sm:$0xf] }
  0x4d   :  { %v2054_v55 = vor.u32 %v2356_v44, %v2051_v45  ;;  %v2333_v45 = vld [vmem:[#allocation4 + $0x2c0] sm:$0xf0] }
  0x4e   :  { %1028 = vmatpush.bf16.msra.mxu0 %v1966_v51  ;;  %v1911_v51 = vld [vmem:[#allocation4 + $0x274] sm:$0xf0] }
  0x4f   :  { %1016 = vmatpush.bf16.msrb.mxu3 %v1786_v58  ;;  %v1711_v58 = vld [vmem:[#allocation4 + $0xe4] sm:$0xf0] }
  0x50   :  { %1054 = vmatpush.bf16.msra.mxu2 %v1810_v52  ;;  %1041 = vmatpush.bf16.msra.mxu1 %v1650_v3  ;;  %v2029_v52 = vld [vmem:[#allocation4 + $0x350] sm:$0xf]  ;;  %v1714_v3 = vor.u32 %v2271_v57, %v1711_v58  ;;  %v2246_v57 = vld [vmem:[#allocation4 + $0xc] sm:$0xf] }
  0x51   :  { %v2030_v0 = vor.u32 %v2353_v56, %v2029_v52  ;;  %v1811_v52 = vld [vmem:[#allocation4 + $0x1ac] sm:$0xf0]  ;;  %v2328_v56 = vld [vmem:[#allocation4 + $0x298] sm:$0xf0] }
  0x52   :  { %1029 = vmatpush.bf16.msra.mxu0 %v1946_v62  ;;  %v1914_v62 = vor.u32 %v2321_v50, %v1911_v51  ;;  %v1951_v50 = vld [vmem:[#allocation4 + $0x2c4] sm:$0xf0]  ;;  %v2296_v51 = vld [vmem:[#allocation4 + $0x19c] sm:$0xf] }
  0x53   :  { %1017 = vmatpush.bf16.msrb.mxu3 %v1766_v7  ;;  %v2266_v7 = vld [vmem:[#allocation4 + $0xac] sm:$0xf] }
  0x54   :  { %1055 = vmatpush.bf16.msra.mxu2 %v1790_v2  ;;  %1042 = vmatpush.bf16.msra.mxu1 %v1630_v15  ;;  %v1891_v2 = vld [vmem:[#allocation4 + $0x24c] sm:$0xf0]  ;;  %v1871_v15 = vld [vmem:[#allocation4 + $0x224] sm:$0xf0]  ;;  %v1694_v16 = vor.u32 %v2266_v7, %v1691_v8  ;;  %v1934_v8 = vor.u32 %v2326_v60, %v1931_v61  ;;  %v2344_v61 = vld [vmem:[#allocation4 + $0x318] sm:$0xf0] }
  0x55   :  { %v1997_v60 = vld [vmem:[#allocation4 + $0x308] sm:$0xf] }
  0x56   :  { %1030 = vmatpush.bf16.msra.mxu0 %v1926_v11 }
  0x58   :  { %1056 = vmatpush.bf16.msra.mxu2 %v1770_v12  ;;  %1043 = vmatpush.bf16.msra.mxu1 %v1610_v18  ;;  %v1894_v12 = vor.u32 %v2316_v1, %v1891_v2  ;;  %v1989_v18 = vld [vmem:[#allocation4 + $0x300] sm:$0xf]  ;;  %v2284_v1 = vld [vmem:[#allocation4 + $0x138] sm:$0xf0]  ;;  %v1917_v2 = vld [vmem:[#allocation4 + $0x268] sm:$0xf] }
  0x59   :  { %v1990_v27 = vor.u32 %v2343_v19, %v1989_v18  ;;  %v2077_v18 = vld [vmem:[#allocation4 + $0x3a8] sm:$0xf]  ;;  %v2364_v19 = vld [vmem:[#allocation4 + $0x3b8] sm:$0xf0] }
  0x96   :  { %v142_v22 = vpop.f32.mrf.mxu0 }
  0x97   :  { %v143_v23 = vadd.f32 %v142_v22, %v91_v20  ;;  %v155_v24 = vpop.f32.mrf.mxu1  ;;  %v2261_v20 = vld [vmem:[#allocation4 + $0x84] sm:$0xf]  ;;  %v1874_v22 = vor.u32 %v2311_v14, %v1871_v15  ;;  %v1897_v14 = vld [vmem:[#allocation4 + $0x240] sm:$0xf]  ;;  %v2319_v15 = vld [vmem:[#allocation4 + $0x250] sm:$0xf0] }
  0x98   :  { %v156_v28 = vadd.f32 %v155_v24, %v92_v21  ;;  %v1671_v21 = vld [vmem:[#allocation4 + $0x94] sm:$0xf0] }
  0x99   :  { %v172_v32 = vmax.f32 %v143_v23, 0.0  ;;  %v2341_v23 = vld [vmem:[#allocation4 + $0x304] sm:$0xf]  ;;  %v1991_v24 = vld [vmem:[#allocation4 + $0x314] sm:$0xf0] }
  0x9a   :  { %v173_v33 = vmax.f32 %v156_v28, 0.0  ;;  %v1674_v28 = vor.u32 %v2261_v20, %v1671_v21  ;;  %v1994_v30 = vor.u32 %v2341_v23, %v1991_v24  ;;  %v1898_v21 = vor.u32 %v2319_v15, %v1897_v14  ;;  %v1717_v23 = vld [vmem:[#allocation4 + $0xd8] sm:$0xf]  ;;  %v2274_v24 = vld [vmem:[#allocation4 + $0xe8] sm:$0xf0] }
  0x9b   :  { %v2572_v36 = vpack.c.bf16 %v172_v32, %v172_v32  ;;  %v2256_v32 = vld [vmem:[#allocation4 + $0x5c] sm:$0xf]  ;;  %v1777_v14 = vld [vmem:[#allocation4 + $0x150] sm:$0xf]  ;;  %v2289_v15 = vld [vmem:[#allocation4 + $0x160] sm:$0xf0] }
  0x9c   :  { %v2574_v42 = vpack.c.bf16 %v173_v33, %v173_v33  ;;  %v1651_v33 = vld [vmem:[#allocation4 + $0x6c] sm:$0xf0] }
  0x9d   :  { %966 = vmatmul.bf16.vlgmr.msra.gmra.mxu3 %v2572_v36  ;;  %1005 = vmatmul.bf16.vlgmr.msrb.gmra.mxu2 %v2572_v36  ;;  %v1654_v41 = vor.u32 %v2256_v32, %v1651_v33  ;;  %v1697_v32 = vld [vmem:[#allocation4 + $0xb0] sm:$0xf]  ;;  %v2269_v33 = vld [vmem:[#allocation4 + $0xc0] sm:$0xf0] }
  0x9e   :  { %v168_v46 = vpop.f32.mrf.mxu2  ;;  %979 = vmatmul.bf16.vlgmr.msrb.gmra.mxu0 %v2574_v42  ;;  %1062 = vmatpush.bf16.msra.mxu3 %v2070_v35  ;;  %v144_v48 = vpop.f32.mrf.mxu0  ;;  %v2336_v35 = vld [vmem:[#allocation4 + $0x2dc] sm:$0xf] }
  0x9f   :  { %v169_v47 = vadd.f32 %v168_v46, %v93_v34  ;;  %1075 = vmatpush.bf16.msrb.mxu0 %v1754_v37  ;;  %v157_v53 = vpop.f32.mrf.mxu1  ;;  %1101 = vmatpush.bf16.msrb.mxu2 %v2074_v38  ;;  %v1854_v34 = vor.u32 %v2306_v25, %v1851_v26  ;;  %v1971_v37 = vld [vmem:[#allocation4 + $0x2ec] sm:$0xf0]  ;;  %v2301_v38 = vld [vmem:[#allocation4 + $0x1c4] sm:$0xf]  ;;  %v2251_v46 = vld [vmem:[#allocation4 + $0x34] sm:$0xf]  ;;  %v2078_v25 = vor.u32 %v2364_v19, %v2077_v18 }
  0xa0   :  { %v1974_v44 = vor.u32 %v2336_v35, %v1971_v37  ;;  %v1834_v48 = vor.u32 %v2301_v38, %v1831_v39  ;;  %v1950_v53 = vor.u32 %v2333_v45, %v1949_v43  ;;  %v1877_v26 = vld [vmem:[#allocation4 + $0x218] sm:$0xf]  ;;  %v1857_v37 = vld [vmem:[#allocation4 + $0x1f0] sm:$0xf]  ;;  %v2309_v38 = vld [vmem:[#allocation4 + $0x200] sm:$0xf0]  ;;  %v1698_v43 = vor.u32 %v2269_v33, %v1697_v32 }
  0xa1   :  { %v174_v59 = vmax.f32 %v169_v47, 0.0  ;;  %v1631_v47 = vld [vmem:[#allocation4 + $0x44] sm:$0xf0]  ;;  %v2037_v39 = vld [vmem:[#allocation4 + $0x358] sm:$0xf]  ;;  %v1778_v19 = vor.u32 %v2289_v15, %v1777_v14  ;;  %v2387_v32 = vld [vmem:[#allocation6 + $0xb0] sm:$0xff] }
  0xa2   :  { %1063 = vmatpush.bf16.msra.mxu3 %v2050_v49  ;;  %v2331_v49 = vld [vmem:[#allocation4 + $0x2b4] sm:$0xf]  ;;  %v1677_v45 = vld [vmem:[#allocation4 + $0x88] sm:$0xf]  ;;  %v2401_v15 = vld [vmem:[#allocation6 + $0x120] sm:$0xff] }
  0xa3   :  { %v2579_v63 = vpack.c.bf16 %v174_v59, %v174_v59  ;;  %1076 = vmatpush.bf16.msrb.mxu0 %v1734_v54  ;;  %1102 = vmatpush.bf16.msrb.mxu2 %v2054_v55  ;;  %v1634_v54 = vor.u32 %v2251_v46, %v1631_v47  ;;  %v1929_v55 = vld [vmem:[#allocation4 + $0x288] sm:$0xf]  ;;  %v1954_v58 = vor.u32 %v2331_v49, %v1951_v50  ;;  %v1611_v59 = vld [vmem:[#allocation4 + $0x1c] sm:$0xf0]  ;;  %v2264_v46 = vld [vmem:[#allocation4 + $0x98] sm:$0xf0] }
  0xa4   :  { %v1930_v6 = vor.u32 %v2328_v56, %v1929_v55  ;;  %v1614_v7 = vor.u32 %v2246_v57, %v1611_v59  ;;  %v2304_v49 = vld [vmem:[#allocation4 + $0x1d8] sm:$0xf0]  ;;  %v2017_v50 = vld [vmem:[#allocation4 + $0x330] sm:$0xf]  ;;  %v1657_v55 = vld [vmem:[#allocation4 + $0x60] sm:$0xf] }
  0xa5   :  { %992 = vmatmul.bf16.vlgmr.msrb.gmra.mxu1 %v2579_v63  ;;  %v2259_v56 = vld [vmem:[#allocation4 + $0x70] sm:$0xf0] }
  0xa6   :  { %1088 = vmatpush.bf16.msrb.mxu1 %v1914_v62  ;;  %v170_v11 = vpop.f32.mrf.mxu2  ;;  %1064 = vmatpush.bf16.msra.mxu3 %v2030_v0  ;;  %v1814_v62 = vor.u32 %v2296_v51, %v1811_v52  ;;  %v1757_v0 = vld [vmem:[#allocation4 + $0x128] sm:$0xf]  ;;  %v2349_v51 = vld [vmem:[#allocation4 + $0x340] sm:$0xf0]  ;;  %v2299_v59 = vld [vmem:[#allocation4 + $0x1b0] sm:$0xf0] }
  0xa7   :  { %1077 = vmatpush.bf16.msrb.mxu0 %v1714_v3  ;;  %1103 = vmatpush.bf16.msrb.mxu2 %v2034_v4  ;;  %v2324_v3 = vld [vmem:[#allocation4 + $0x278] sm:$0xf0]  ;;  %v2291_v4 = vld [vmem:[#allocation4 + $0x174] sm:$0xf]  ;;  %v1758_v9 = vor.u32 %v2284_v1, %v1757_v0  ;;  %v2370_v52 = vld [vmem:[#allocation6 + $0x28] sm:$0xff]  ;;  %v2018_v57 = vor.u32 %v2349_v51, %v2017_v50  ;;  %v1658_v0 = vor.u32 %v2259_v56, %v1657_v55 }
  0xa8   :  { %v1918_v10 = vor.u32 %v2324_v3, %v1917_v2  ;;  %v1794_v11 = vor.u32 %v2291_v4, %v1791_v5  ;;  %v1637_v2 = vld [vmem:[#allocation4 + $0x38] sm:$0xf]  ;;  %v2254_v3 = vld [vmem:[#allocation4 + $0x48] sm:$0xf0]  ;;  %v1998_v4 = vor.u32 %v2344_v61, %v1997_v60  ;;  %v2375_v33 = vld [vmem:[#allocation6 + $0x50] sm:$0xff] }
  0xa9   :  { %v1797_v5 = vld [vmem:[#allocation4 + $0x178] sm:$0xf]  ;;  %v2389_v61 = vld [vmem:[#allocation6 + $0xc0] sm:$0xff] }
  0xaa   :  { %1089 = vmatpush.bf16.msrb.mxu1 %v1894_v12  ;;  %1065 = vmatpush.bf16.msra.mxu3 %v2010_v13  ;;  %v1737_v12 = vld [vmem:[#allocation4 + $0x100] sm:$0xf]  ;;  %v2279_v13 = vld [vmem:[#allocation4 + $0x110] sm:$0xf0] }
  0xab   :  { %1078 = vmatpush.bf16.msrb.mxu0 %v1694_v16  ;;  %1104 = vmatpush.bf16.msrb.mxu2 %v2014_v17  ;;  %v2286_v16 = vld [vmem:[#allocation4 + $0x14c] sm:$0xf]  ;;  %v1771_v17 = vld [vmem:[#allocation4 + $0x15c] sm:$0xf0]  ;;  %v1738_v20 = vor.u32 %v2279_v13, %v1737_v12  ;;  %v2249_v12 = vld [vmem:[#allocation4 + $0x20] sm:$0xf0] }
  0xad   :  { %1018 = vmatmul.bf16.vlgmr.msrb.gmra.mxu3 %v2574_v42  ;;  %1057 = vmatmul.bf16.vlgmr.msra.gmra.mxu2 %v2574_v42 }
  0xae   :  { %1090 = vmatpush.bf16.msrb.mxu1 %v1874_v22  ;;  %1031 = vmatmul.bf16.vlgmr.msra.gmra.mxu0 %v2579_v63  ;;  %v1774_v22 = vor.u32 %v2286_v16, %v1771_v17  ;;  %v1957_v16 = vld [vmem:[#allocation4 + $0x2b8] sm:$0xf]  ;;  %v2334_v17 = vld [vmem:[#allocation4 + $0x2c8] sm:$0xf0] }
  0xaf   :  { %1066 = vmatpush.bf16.msra.mxu3 %v1990_v27  ;;  %1079 = vmatpush.bf16.msrb.mxu0 %v1674_v28  ;;  %v2314_v27 = vld [vmem:[#allocation4 + $0x228] sm:$0xf0]  ;;  %v2057_v28 = vld [vmem:[#allocation4 + $0x380] sm:$0xf] }
  0xb0   :  { %1105 = vmatpush.bf16.msrb.mxu2 %v1994_v30  ;;  %v1718_v30 = vor.u32 %v2274_v24, %v1717_v23  ;;  %v1878_v31 = vor.u32 %v2314_v27, %v1877_v26  ;;  %v2058_v35 = vor.u32 %v2359_v29, %v2057_v28  ;;  %v2380_v24 = vld [vmem:[#allocation6 + $0x78] sm:$0xff]  ;;  %v2379_v26 = vld [vmem:[#allocation6 + $0x70] sm:$0xff]  ;;  %v2378_v28 = vld [vmem:[#allocation6 + $0x68] sm:$0xff] }
  0xb1   :  { %v2367_v27 = vld [vmem:[#allocation6 + $0x10] sm:$0xff]  ;;  %v2366_v29 = vld [vmem:[#allocation6 + $0x8] sm:$0xff] }
  0xb2   :  { %1091 = vmatpush.bf16.msrb.mxu1 %v1854_v34  ;;  %v2372_v34 = vld [vmem:[#allocation6 + $0x38] sm:$0xff] }
  0xb3   :  { %1067 = vmatpush.bf16.msra.mxu3 %v1970_v40  ;;  %1080 = vmatpush.bf16.msrb.mxu0 %v1654_v41  ;;  %v2354_v40 = vld [vmem:[#allocation4 + $0x368] sm:$0xf0]  ;;  %v2371_v41 = vld [vmem:[#allocation6 + $0x30] sm:$0xff] }
  0xb4   :  { %1106 = vmatpush.bf16.msrb.mxu2 %v1974_v44  ;;  %v1858_v44 = vor.u32 %v2309_v38, %v1857_v37  ;;  %v2038_v47 = vor.u32 %v2354_v40, %v2037_v39  ;;  %v2374_v37 = vld [vmem:[#allocation6 + $0x48] sm:$0xff]  ;;  %v2385_v39 = vld [vmem:[#allocation6 + $0xa0] sm:$0xff] }
  0xb5   :  { %1044 = vmatmul.bf16.vlgmr.msra.gmra.mxu1 %v2572_v36  ;;  %v2394_v38 = vld [vmem:[#allocation6 + $0xe8] sm:$0xff]  ;;  %v2373_v40 = vld [vmem:[#allocation6 + $0x40] sm:$0xff] }
  0xb6   :  { %1092 = vmatpush.bf16.msrb.mxu1 %v1834_v48  ;;  %v1837_v48 = vld [vmem:[#allocation4 + $0x1c8] sm:$0xf] }
  0xb7   :  { %1068 = vmatpush.bf16.msra.mxu3 %v1950_v53  ;;  %1081 = vmatpush.bf16.msrb.mxu0 %v1634_v54  ;;  %v1678_v53 = vor.u32 %v2264_v46, %v1677_v45  ;;  %v1838_v54 = vor.u32 %v2304_v49, %v1837_v48  ;;  %v2392_v46 = vld [vmem:[#allocation6 + $0xd8] sm:$0xff]  ;;  %v2391_v49 = vld [vmem:[#allocation6 + $0xd0] sm:$0xff] }
  0xb8   :  { %1107 = vmatpush.bf16.msrb.mxu2 %v1954_v58  ;;  %v1817_v58 = vld [vmem:[#allocation4 + $0x1a0] sm:$0xf] }
  0xb9   :  { %v1818_v1 = vor.u32 %v2299_v59, %v1817_v58  ;;  %v2381_v59 = vld [vmem:[#allocation6 + $0x80] sm:$0xff] }
  0xba   :  { %1093 = vmatpush.bf16.msrb.mxu1 %v1814_v62  ;;  %v2369_v62 = vld [vmem:[#allocation6 + $0x20] sm:$0xff] }
  0xbb   :  { %1069 = vmatpush.bf16.msra.mxu3 %v1930_v6  ;;  %1082 = vmatpush.bf16.msrb.mxu0 %v1614_v7  ;;  %v2294_v6 = vld [vmem:[#allocation4 + $0x188] sm:$0xf0]  ;;  %v1977_v7 = vld [vmem:[#allocation4 + $0x2e0] sm:$0xf] }
  0xbc   :  { %1108 = vmatpush.bf16.msrb.mxu2 %v1934_v8  ;;  %v2339_v8 = vld [vmem:[#allocation4 + $0x2f0] sm:$0xf0] }
  0xbd   :  { %v1978_v13 = vor.u32 %v2339_v8, %v1977_v7 }
  0xbe   :  { %1094 = vmatpush.bf16.msrb.mxu1 %v1794_v11  ;;  %1070 = vmatmul.bf16.vlgmr.msra.gmra.mxu3 %v2579_v63  ;;  %v1617_v11 = vld [vmem:[#allocation4 + $0x10] sm:$0xf] }
  0xbf   :  { %1114 = vmatpush.bf16.msrb.mxu3 %v1758_v9  ;;  %1127 = vmatpush.bf16.msra.mxu0 %v1918_v10  ;;  %v1638_v9 = vor.u32 %v2254_v3, %v1637_v2  ;;  %v1798_v10 = vor.u32 %v2294_v6, %v1797_v5  ;;  %v1618_v18 = vor.u32 %v2249_v12, %v1617_v11  ;;  %v2404_v3 = vld [vmem:[#allocation6 + $0x138] sm:$0xff]  ;;  %v2403_v6 = vld [vmem:[#allocation6 + $0x130] sm:$0xff] }
  0xc0   :  { %1083 = vmatmul.bf16.vlgmr.msrb.gmra.mxu0 %v2572_v36  ;;  %1109 = vmatmul.bf16.vlgmr.msrb.gmra.mxu2 %v2579_v63 }
  0xc1   :  { %1487 = vmatpush.bf16.msra.mxu2 %v2372_v34  ;;  %v2395_v34 = vld [vmem:[#allocation6 + $0xf0] sm:$0xff] }
  0xc2   :  { %1095 = vmatpush.bf16.msrb.mxu1 %v1774_v22  ;;  %v2329_v22 = vld [vmem:[#allocation4 + $0x2a0] sm:$0xf0] }
  0xc3   :  { %1115 = vmatpush.bf16.msrb.mxu3 %v1738_v20  ;;  %1128 = vmatpush.bf16.msra.mxu0 %v1898_v21  ;;  %v1958_v20 = vor.u32 %v2334_v17, %v1957_v16  ;;  %v1937_v21 = vld [vmem:[#allocation4 + $0x290] sm:$0xf] }
  0xc4   :  { %v1938_v23 = vor.u32 %v2329_v22, %v1937_v21  ;;  %v2400_v22 = vld [vmem:[#allocation6 + $0x118] sm:$0xff] }
  0xc5   :  { %1096 = vmatmul.bf16.vlgmr.msrb.gmra.mxu1 %v2574_v42  ;;  %1488 = vmatpush.bf16.msra.mxu2 %v2371_v41  ;;  %v2393_v41 = vld [vmem:[#allocation6 + $0xe0] sm:$0xff] }
  0xc6   :  { %1140 = vmatpush.bf16.msra.mxu1 %v2078_v25  ;;  %v2368_v25 = vld [vmem:[#allocation6 + $0x18] sm:$0xff] }
  0xc7   :  { %1116 = vmatpush.bf16.msrb.mxu3 %v1718_v30  ;;  %1129 = vmatpush.bf16.msra.mxu0 %v1878_v31  ;;  %v2377_v30 = vld [vmem:[#allocation6 + $0x60] sm:$0xff]  ;;  %v2388_v31 = vld [vmem:[#allocation6 + $0xb8] sm:$0xff] }
  0xc9   :  { %1489 = vmatpush.bf16.msra.mxu2 %v2370_v52 }
  0xca   :  { %1141 = vmatpush.bf16.msra.mxu1 %v2058_v35  ;;  %v2386_v35 = vld [vmem:[#allocation6 + $0xa8] sm:$0xff] }
  0xcb   :  { %1117 = vmatpush.bf16.msrb.mxu3 %v1698_v43  ;;  %1130 = vmatpush.bf16.msra.mxu0 %v1858_v44  ;;  %v2384_v43 = vld [vmem:[#allocation6 + $0x98] sm:$0xff]  ;;  %v2596_v44 = vld [vmem:[%s2619_s4] sm:$0x1f] }
  0xcc   :  { %v324_v48 = vperm.slane %v2596_v44, 0 }
  0xcd   :  { %1490 = vmatpush.bf16.msra.mxu2 %v2369_v62 }
  0xce   :  { %1142 = vmatpush.bf16.msra.mxu1 %v2038_v47  ;;  %v2383_v47 = vld [vmem:[#allocation6 + $0x90] sm:$0xff] }
  0xcf   :  { %1118 = vmatpush.bf16.msrb.mxu3 %v1678_v53  ;;  %1131 = vmatpush.bf16.msra.mxu0 %v1838_v54  ;;  %v2382_v54 = vld [vmem:[#allocation6 + $0x88] sm:$0xff] }
  0xd1   :  { %1491 = vmatpush.bf16.msra.mxu2 %v2368_v25  ;;  %v327_v25 = vperm.slane %v2596_v44, 3 }
  0xd2   :  { %1143 = vmatpush.bf16.msra.mxu1 %v2018_v57  ;;  %v2390_v57 = vld [vmem:[#allocation6 + $0xc8] sm:$0xff] }
  0xd3   :  { %1119 = vmatpush.bf16.msrb.mxu3 %v1658_v0  ;;  %1132 = vmatpush.bf16.msra.mxu0 %v1818_v1 }
  0xd5   :  { %1492 = vmatpush.bf16.msra.mxu2 %v2367_v27 }
  0xd6   :  { %1144 = vmatpush.bf16.msra.mxu1 %v1998_v4  ;;  %v325_v4 = vperm.slane %v2596_v44, 1 }
  0xd7   :  { %1120 = vmatpush.bf16.msrb.mxu3 %v1638_v9  ;;  %1133 = vmatpush.bf16.msra.mxu0 %v1798_v10  ;;  %v2402_v9 = vld [vmem:[#allocation6 + $0x128] sm:$0xff] }
  0xd9   :  { %1493 = vmatpush.bf16.msra.mxu2 %v2366_v29 }
  0xda   :  { %1145 = vmatpush.bf16.msra.mxu1 %v1978_v13 }
  0xdb   :  { %1121 = vmatpush.bf16.msrb.mxu3 %v1618_v18  ;;  %1134 = vmatpush.bf16.msra.mxu0 %v1778_v19  ;;  %v326_v18 = vperm.slane %v2596_v44, 2 }
  0xde   :  { %1146 = vmatpush.bf16.msra.mxu1 %v1958_v20  ;;  %1122 = vmatmul.bf16.vlgmr.msrb.gmra.mxu3 %v2572_v36  ;;  %v2365_v36 = vld [vmem:[#allocation6] sm:$0xff] }
  0xdf   :  { %1135 = vmatmul.bf16.vlgmr.msra.gmra.mxu0 %v2574_v42  ;;  %1500 = vmatpush.bf16.msra.mxu3 %v2380_v24  ;;  %v2376_v42 = vld [vmem:[#allocation6 + $0x58] sm:$0xff] }
  0xe0   :  { %1494 = vmatpush.bf16.msra.mxu2 %v2365_v36  ;;  %1513 = vmatpush.bf16.msrb.mxu0 %v2388_v31  ;;  %v2398_v36 = vld [vmem:[#allocation6 + $0x108] sm:$0xff] }
  0xe2   :  { %1147 = vmatpush.bf16.msra.mxu1 %v1938_v23 }
  0xe3   :  { %1501 = vmatpush.bf16.msra.mxu3 %v2379_v26  ;;  %v2399_v26 = vld [vmem:[#allocation6 + $0x110] sm:$0xff] }
  0xe4   :  { %1514 = vmatpush.bf16.msrb.mxu0 %v2387_v32  ;;  %1539 = vmatpush.bf16.msrb.mxu2 %v2404_v3 }
  0xe5   :  { %1148 = vmatmul.bf16.vlgmr.msra.gmra.mxu1 %v2579_v63  ;;  %v2396_v63 = vld [vmem:[#allocation6 + $0xf8] sm:$0xff] }
  0xe6   :  { %1526 = vmatpush.bf16.msrb.mxu1 %v2396_v63 }
  0xe7   :  { %1502 = vmatpush.bf16.msra.mxu3 %v2378_v28 }
  0xe8   :  { %1515 = vmatpush.bf16.msrb.mxu0 %v2386_v35  ;;  %1540 = vmatpush.bf16.msrb.mxu2 %v2403_v6  ;;  %v2397_v35 = vld [vmem:[#allocation6 + $0x100] sm:$0xff]  ;;  %v2415_v6 = vld [vmem:[%s2622_s7] ss:$0 sm:$0xff] }
  0xea   :  { %1527 = vmatpush.bf16.msrb.mxu1 %v2395_v34 }
  0xeb   :  { %1503 = vmatpush.bf16.msra.mxu3 %v2377_v30 }
  0xec   :  { %1516 = vmatpush.bf16.msrb.mxu0 %v2385_v39  ;;  %1541 = vmatpush.bf16.msrb.mxu2 %v2402_v9 }
  0xee   :  { %1528 = vmatpush.bf16.msrb.mxu1 %v2394_v38 }
  0xef   :  { %1504 = vmatpush.bf16.msra.mxu3 %v2376_v42 }
  0xf0   :  { %1517 = vmatpush.bf16.msrb.mxu0 %v2384_v43  ;;  %1542 = vmatpush.bf16.msrb.mxu2 %v2401_v15 }
  0xf2   :  { %1529 = vmatpush.bf16.msrb.mxu1 %v2393_v41 }
  0xf3   :  { %1505 = vmatpush.bf16.msra.mxu3 %v2375_v33 }
  0xf4   :  { %1518 = vmatpush.bf16.msrb.mxu0 %v2383_v47  ;;  %1543 = vmatpush.bf16.msrb.mxu2 %v2400_v22 }
  0xf6   :  { %1530 = vmatpush.bf16.msrb.mxu1 %v2392_v46  ;;  %v328_v46 = vperm.slane %v2596_v44, 4  ;;  %v2414_v44 = vld [vmem:[%s2621_s6] ss:$0 sm:$0xff] }
  0xf7   :  { %1506 = vmatpush.bf16.msra.mxu3 %v2374_v37 }
  0xf8   :  { %1519 = vmatpush.bf16.msrb.mxu0 %v2382_v54  ;;  %1544 = vmatpush.bf16.msrb.mxu2 %v2399_v26 }
  0xfa   :  { %1531 = vmatpush.bf16.msrb.mxu1 %v2391_v49 }
  0xfb   :  { %1507 = vmatpush.bf16.msra.mxu3 %v2373_v40 }
  0xfc   :  { %1520 = vmatpush.bf16.msrb.mxu0 %v2381_v59  ;;  %1545 = vmatpush.bf16.msrb.mxu2 %v2398_v36 }
  0xfe   :  { %1532 = vmatpush.bf16.msrb.mxu1 %v2390_v57 }
 0x100   :  { %1546 = vmatpush.bf16.msrb.mxu2 %v2397_v35 }
 0x102   :  { %1533 = vmatpush.bf16.msrb.mxu1 %v2389_v61 }
 0x11b   :  { %v980_v45 = vpop.f32.mrf.mxu0 }
 0x120   :  { %v967_v50 = vpop.f32.mrf.mxu3  ;;  %v1006_v51 = vpop.f32.mrf.mxu2 }
 0x121   :  { %v968_v52 = vadd.f32 %v967_v50, %v324_v48  ;;  %v1007_v7 = vadd.f32 %v1006_v51, %v325_v4 }
 0x122   :  { %v993_v53 = vpop.f32.mrf.mxu1 }
 0x123   :  { %v981_v55 = vadd.f32 %v980_v45, %v968_v52  ;;  %v982_v56 = vpop.f32.mrf.mxu0 }
 0x125   :  { %v994_v58 = vadd.f32 %v993_v53, %v981_v55 }
 0x127   :  { %v1153_v60 = vmax.f32 %v994_v58, 0.0 }
 0x128   :  { %v969_v62 = vpop.f32.mrf.mxu3  ;;  %v1008_v0 = vpop.f32.mrf.mxu2 }
 0x129   :  { %v1158_v1 = vpack.c.bf16 %v1153_v60, %v1153_v60 }
 0x12a   :  { %v995_v2 = vpop.f32.mrf.mxu1 }
 0x12b   :  { %v1032_v5 = vpop.f32.mrf.mxu0  ;;  %1495 = vmatmul.bf16.vlgmr.msra.gmra.mxu2 %v1158_v1 }
 0x130   :  { %v1019_v8 = vpop.f32.mrf.mxu3  ;;  %v1058_v12 = vpop.f32.mrf.mxu2 }
 0x131   :  { %v1020_v10 = vadd.f32 %v1019_v8, %v1007_v7 }
 0x132   :  { %v1045_v11 = vpop.f32.mrf.mxu1 }
 0x133   :  { %v1033_v13 = vadd.f32 %v1032_v5, %v1020_v10  ;;  %v1034_v14 = vpop.f32.mrf.mxu0  ;;  %v1046_v24 = vadd.f32 %v1045_v11, %v326_v18  ;;  %v2416_v11 = vld [vmem:[%s2623_s8] ss:$0 sm:$0xff] }
 0x135   :  { %v1154_v16 = vmax.f32 %v1033_v13, 0.0  ;;  %v1059_v27 = vadd.f32 %v1058_v12, %v1046_v24 }
 0x137   :  { %v1159_v17 = vpack.c.bf16 %v1154_v16, %v1154_v16 }
 0x138   :  { %v1021_v19 = vpop.f32.mrf.mxu3  ;;  %v1060_v21 = vpop.f32.mrf.mxu2 }
 0x139   :  { %1508 = vmatmul.bf16.vlgmr.msra.gmra.mxu3 %v1159_v17 }
 0x13a   :  { %v1047_v20 = vpop.f32.mrf.mxu1 }
 0x13d   :  { %v1084_v23 = vpop.f32.mrf.mxu0 }
 0x13e   :  { %v1085_v28 = vadd.f32 %v1084_v23, %v327_v25 }
 0x141   :  { %v1071_v29 = vpop.f32.mrf.mxu3 }
 0x142   :  { %v1097_v30 = vpop.f32.mrf.mxu1  ;;  %v1072_v31 = vadd.f32 %v1071_v29, %v1059_v27 }
 0x143   :  { %v1098_v42 = vadd.f32 %v1097_v30, %v1085_v28  ;;  %v1110_v63 = vpop.f32.mrf.mxu2 }
 0x144   :  { %v1155_v33 = vmax.f32 %v1072_v31, 0.0 }
 0x145   :  { %v1086_v32 = vpop.f32.mrf.mxu0  ;;  %v1111_v34 = vadd.f32 %v1110_v63, %v1098_v42 }
 0x146   :  { %v1160_v37 = vpack.c.bf16 %v1155_v33, %v1155_v33 }
 0x147   :  { %v1156_v38 = vmax.f32 %v1111_v34, 0.0 }
 0x148   :  { %1521 = vmatmul.bf16.vlgmr.msrb.gmra.mxu0 %v1160_v37 }
 0x149   :  { %v1161_v39 = vpack.c.bf16 %v1156_v38, %v1156_v38  ;;  %v1073_v40 = vpop.f32.mrf.mxu3 }
 0x14a   :  { %v1099_v41 = vpop.f32.mrf.mxu1 }
 0x14b   :  { %v1112_v43 = vpop.f32.mrf.mxu2  ;;  %1534 = vmatmul.bf16.vlgmr.msrb.gmra.mxu1 %v1161_v39 }
 0x15c   :  { %v1136_v45 = vpop.f32.mrf.mxu0 }
 0x161   :  { %v1123_v47 = vpop.f32.mrf.mxu3 }
 0x162   :  { %v1149_v48 = vpop.f32.mrf.mxu1  ;;  %v1124_v49 = vadd.f32 %v1123_v47, %v328_v46 }
 0x164   :  { %v1137_v50 = vadd.f32 %v1136_v45, %v1124_v49  ;;  %v1138_v51 = vpop.f32.mrf.mxu0 }
 0x166   :  { %v1150_v52 = vadd.f32 %v1149_v48, %v1137_v50 }
 0x168   :  { %v1157_v53 = vmax.f32 %v1150_v52, 0.0 }
 0x169   :  { %v1125_v54 = vpop.f32.mrf.mxu3 }
 0x16a   :  { %v1151_v55 = vpop.f32.mrf.mxu1  ;;  %v1162_v56 = vpack.c.bf16 %v1157_v53, %v1157_v53 }
 0x16c   :  { %1547 = vmatmul.bf16.vlgmr.msrb.gmra.mxu2 %v1162_v56 }
 0x1ae   :  { %v1496_v57 = vpop.f32.mrf.mxu2 }
 0x1af   :  { %v1497_v2 = vadd.f32 %v2414_v44, %v1496_v57 }
 0x1b6   :  { %v1498_v58 = vpop.f32.mrf.mxu2 }
 0x1bc   :  { %v1509_v59 = vpop.f32.mrf.mxu3 }
 0x1bd   :  { %v1510_v3 = vadd.f32 %v1509_v59, %v1497_v2 }
 0x1c4   :  { %v1511_v60 = vpop.f32.mrf.mxu3 }
 0x1c5   :  { %v1522_v61 = vpop.f32.mrf.mxu0 }
 0x1c6   :  { %v1523_v4 = vadd.f32 %v1522_v61, %v1510_v3 }
 0x1c8   :  { %v1535_v62 = vpop.f32.mrf.mxu1 }
 0x1c9   :  { %v1536_v5 = vadd.f32 %v1535_v62, %v1523_v4 }
 0x1cd   :  { %v1524_v0 = vpop.f32.mrf.mxu0 }
 0x1d0   :  { %v1537_v1 = vpop.f32.mrf.mxu1 }
 0x1ef   :  { %v1548_v7 = vpop.f32.mrf.mxu2 }
 0x1f0   :  { %v1549_v8 = vadd.f32 %v1548_v7, %v1536_v5 }
 0x1f2   :  { %v1556_v9 = vmul.f32 %v2415_v6, %v1549_v8 }
 0x1f4   :  { %2417 = vtanh.f32 %v1556_v9 }
 0x1f7   :  { %v1550_v10 = vpop.f32.mrf.mxu2 }
 0x1fa   :  { %v2418_v12 = vpop.eup %2417 }
 0x1fb   :  { %v1558_v13 = vmul.f32 %v2418_v12, %v2415_v6 }
 0x1fd   :  { %v1563_v14 = vadd.f32 %v2416_v11, %v1558_v13 }
 0x1ff   :  { %v1564_v15 = vpack.c.bf16 %v1563_v14, %v1563_v14 }
 0x201   :  { %1565 = vst [vmem:[%s2624_s9] sm:$0xf] %v1564_v15 }
 0x202   :  { %1570 = vsyncpa [#allocation3], 1 }
 0x203   :  { %1571 = vsyncpa [#allocation5], 1 }

</bundles_post_ra>
